<compile_context>
chip_gen: v5e
topology: v5e:2x2
jax: 0.10.0
libtpu: 0.0.40
codegen_flags: <defaults>
</compile_context>

<pallas_src>
import functools

import jax
import jax.numpy as jnp
import numpy as np
from jax.experimental import pallas as pl
from jax.experimental.pallas import tpu as pltpu

_LANE = 128
_SUBLANE = 8
_MAX_COLS = 8192   # lane columns per grid step (=> 65536 rois/step, ~14 MiB VMEM)


def _ceil_to(x, m):
    return ((x + m - 1) // m) * m


def _num_tensorcores():
    """Best-effort TensorCore count: v7x has 2 TCs/chip, v5e/v6e have 1."""
    try:
        kind = jax.devices()[0].device_kind.lower()
        if "v7" in kind or "7x" in kind:
            return 2
    except Exception:
        pass
    return 1


def _choose_layout(num_rois):
    """Returns (n_steps, cols). Each grid step covers 8*cols rois (cols % 128 == 0).

    v5e/v6e (1 TC): one big step minimizes the ~0.35us/step fixed cost.
    v7x (2 TC): exactly two half-sized steps so dimension_semantics=("parallel",)
    can shard the roi axis across both TensorCores.
    A VMEM cap (~1.75 KiB/column incl. double buffering + live temps) adds
    more steps only for very large N.
    """
    cols_needed = _ceil_to(max((num_rois + _SUBLANE - 1) // _SUBLANE, 1), _LANE)
    n_steps = 1
    if _num_tensorcores() >= 2 and cols_needed > _LANE:
        n_steps = 2
    while _ceil_to(-(-cols_needed // n_steps), _LANE) > _MAX_COLS:
        n_steps += 1
    cols = _ceil_to(-(-cols_needed // n_steps), _LANE)
    return n_steps, cols


def _ubr_iou_kernel(threshold, gt_ref, rois_ref, pred_ref, out_ref):
    """One grid step over a sublane+lane-dense tile of 8*cols rois.

    rois_ref / pred_ref: [4, 8, cols] f32 VMEM blocks, axis0 = coordinate;
        roi n of the tile sits at (sublane n % 8, column n // 8).
    gt_ref: [G, 4] f32 resident in SMEM (scalar reads, free broadcast).
    out_ref: [8, 8, cols] packed slab: rows 0-3 refined box, 4 max_iou,
        5 loss, 6 argmax gt idx (as f32 -- exact while G < 2**24),
        7 selection mask (max_iou > threshold).
    """
    ax1 = rois_ref[0]
    ay1 = rois_ref[1]
    ax2 = rois_ref[2]
    ay2 = rois_ref[3]                                   # dense [8, cols] slabs
    area_a = (ax2 - ax1) * (ay2 - ay1)

    # ---- running max / argmax / matched-gt over the small static gt axis ----
    # Scalar gt operands broadcast for free in the VLIW bundle; no [G, T]
    # temps, no cross-sublane reductions, no one-hot gather.
    max_iou = jnp.full_like(ax1, -jnp.inf)
    max_idx = jnp.zeros_like(ax1)
    mgx1 = jnp.zeros_like(ax1)
    mgy1 = jnp.zeros_like(ax1)
    mgx2 = jnp.zeros_like(ax1)
    mgy2 = jnp.zeros_like(ax1)
    num_gt = gt_ref.shape[0]
    for g in range(num_gt):                             # static, fully unrolled
        gx1 = gt_ref[g, 0]
        gy1 = gt_ref[g, 1]
        gx2 = gt_ref[g, 2]
        gy2 = gt_ref[g, 3]
        area_g = (gx2 - gx1) * (gy2 - gy1)
        iw = jnp.maximum(jnp.minimum(ax2, gx2) - jnp.maximum(ax1, gx1), 0.0)
        ih = jnp.maximum(jnp.minimum(ay2, gy2) - jnp.maximum(ay1, gy1), 0.0)
        inter = iw * ih
        # full-precision divide here: this IoU drives argmax + threshold compare
        iou_g = inter / (area_a + area_g - inter)
        upd = iou_g > max_iou                           # strict >: first idx wins ties
        max_iou = jnp.where(upd, iou_g, max_iou)
        max_idx = jnp.where(upd, jnp.float32(g), max_idx)
        mgx1 = jnp.where(upd, gx1, mgx1)
        mgy1 = jnp.where(upd, gy1, mgy1)
        mgx2 = jnp.where(upd, gx2, mgx2)
        mgy2 = jnp.where(upd, gy2, mgy2)

    # ---- inverse_transform(rois, bbox_pred) (+1 width/height convention) ----
    w = ax2 - ax1 + 1.0
    h = ay2 - ay1 + 1.0
    cx = ax1 + 0.5 * w
    cy = ay1 + 0.5 * h
    dx = pred_ref[0]
    dy = pred_ref[1]
    dw = pred_ref[2]
    dh = pred_ref[3]
    pcx = dx * w + cx
    pcy = dy * h + cy
    pw = jnp.exp(dw) * w
    ph = jnp.exp(dh) * h
    rx1 = pcx - 0.5 * pw
    ry1 = pcy - 0.5 * ph
    rx2 = pcx + 0.5 * pw
    ry2 = pcy + 0.5 * ph

    # ---- elementwise IoU loss vs matched gt: -log(iou + 0.1) ----------------
    iw2 = jnp.maximum(jnp.minimum(rx2, mgx2) - jnp.maximum(rx1, mgx1), 0.0)
    ih2 = jnp.maximum(jnp.minimum(ry2, mgy2) - jnp.maximum(ry1, mgy1), 0.0)
    inter2 = iw2 * ih2
    area_r = (rx2 - rx1) * (ry2 - ry1)
    area_m = (mgx2 - mgx1) * (mgy2 - mgy1)
    iou2 = inter2 * pl.reciprocal(area_r + area_m - inter2, approx=True)
    loss = -jnp.log(iou2 + 0.1)

    sel = (max_iou > threshold).astype(jnp.float32)

    # ---- dense full-vreg stores (lane + sublane dense, no masked partials) --
    out_ref[0] = rx1
    out_ref[1] = ry1
    out_ref[2] = rx2
    out_ref[3] = ry2
    out_ref[4] = max_iou
    out_ref[5] = loss
    out_ref[6] = max_idx
    out_ref[7] = sel


def _ubr_pallas(gt_box, rois_s, pred_s, threshold, n_steps, cols):
    n_cols_total = rois_s.shape[2]
    kernel = functools.partial(_ubr_iou_kernel, float(threshold))
    return pl.pallas_call(
        kernel,
        out_shape=jax.ShapeDtypeStruct((8, _SUBLANE, n_cols_total), jnp.float32),
        grid=(n_steps,),
        in_specs=[
            pl.BlockSpec(memory_space=pltpu.MemorySpace.SMEM),      # gt [G, 4]
            pl.BlockSpec((4, _SUBLANE, cols), lambda i: (0, 0, i)),  # rois
            pl.BlockSpec((4, _SUBLANE, cols), lambda i: (0, 0, i)),  # bbox_pred
        ],
        out_specs=pl.BlockSpec((8, _SUBLANE, cols), lambda i: (0, 0, i)),
        compiler_params=pltpu.CompilerParams(
            dimension_semantics=("parallel",),
            vmem_limit_bytes=32 * 1024 * 1024),
    )(gt_box, rois_s, pred_s)


@functools.partial(jax.jit, static_argnums=3)
def _ubr_forward(rois, bbox_pred, gt_box, overlap_threshold):
    rois = rois.astype(jnp.float32)
    bbox_pred = bbox_pred.astype(jnp.float32)
    gt_box = gt_box.astype(jnp.float32)

    num_rois = rois.shape[0]
    n_steps, cols = _choose_layout(num_rois)
    n_pad = n_steps * _SUBLANE * cols
    pad = n_pad - num_rois

    # Sublane+lane dense packing (layout plumbing kept in the wrapper):
    # roi n -> (coord, sublane n % 8, column n // 8).  Zero padding is safe
    # (zero-area roi -> iou 0; padded lanes are sliced off before use).
    rois_p = jnp.pad(rois, ((0, pad), (0, 0)))
    pred_p = jnp.pad(bbox_pred, ((0, pad), (0, 0)))
    rois_s = jnp.transpose(rois_p.reshape(n_pad // _SUBLANE, _SUBLANE, 4), (2, 1, 0))
    pred_s = jnp.transpose(pred_p.reshape(n_pad // _SUBLANE, _SUBLANE, 4), (2, 1, 0))

    out = _ubr_pallas(gt_box, rois_s, pred_s, overlap_threshold, n_steps, cols)

    # [8, 8, cols_total] -> [num_rois, 8]: row n = roi n, columns = quantities.
    out_flat = jnp.transpose(out, (2, 1, 0)).reshape(n_pad, 8)[:num_rois]
    refined_all = out_flat[:, 0:4]
    max_iou = out_flat[:, 4]
    loss_all = out_flat[:, 5]
    mask = out_flat[:, 7] > 0.5        # selection mask computed in-kernel

    # On-device compaction with a static upper bound: O(N) prefix-sum + scatter
    # (stable partition; replaces the former argsort).
    count = jnp.sum(mask.astype(jnp.int32))
    idx = jnp.arange(num_rois, dtype=jnp.int32)
    dest = jnp.where(mask, jnp.cumsum(mask.astype(jnp.int32)) - 1, num_rois)
    order = jnp.zeros(num_rois + 1, jnp.int32).at[dest].set(idx)[:num_rois]
    valid = idx < count
    loss = jnp.where(valid, loss_all[order], 0.0)
    refined = jnp.where(valid[:, None], refined_all[order], 0.0)
    return loss, count, refined, max_iou


def ubr_iou_loss(rois, bbox_pred, gt_box, overlap_threshold):
    """Mirrors UBR_IoULoss.forward.

    Returns (loss, n_selected, num_rois, refined_rois) with static shapes:
    loss is [num_rois] and refined_rois is [num_rois, 4]; only the first
    n_selected rows are valid (selected rois, original order), the rest is
    zero padding.  n_selected is a device int32 scalar, so the whole path
    stays on device with no blocking host sync.
    """
    # TODO(synk): the PyTorch module returns dynamically-shaped tensors of
    # length n_selected; exact dynamic shapes require a host-synced slice,
    # which is deferred to the caller (done only in the demo below).
    num_rois = rois.shape[0]
    loss, count, refined, _ = _ubr_forward(
        jnp.asarray(rois), jnp.asarray(bbox_pred), jnp.asarray(gt_box),
        float(overlap_threshold))
    return loss, count, num_rois, refined


if __name__ == "__main__":
    key = jax.random.PRNGKey(0)
    k_gxy, k_gwh, k_noise, k_pred = jax.random.split(key, 4)

    N, G = 16, 3
    overlap_threshold = 0.3

    gxy = jax.random.uniform(k_gxy, (G, 2), minval=0.0, maxval=40.0)
    gwh = jax.random.uniform(k_gwh, (G, 2), minval=15.0, maxval=40.0)
    gt_box = jnp.concatenate([gxy, gxy + gwh], axis=1)            # [G, 4]

    # rois = jittered copies of the gt boxes (guarantees IoU > threshold)
    base = jnp.tile(gt_box, (N // G + 1, 1))[:N]
    rois = base + 2.0 * jax.random.normal(k_noise, (N, 4))        # [N, 4]
    bbox_pred = 0.1 * jax.random.normal(k_pred, (N, 4))           # [N, 4]

    loss, n_selected, num_rois, refined_rois = ubr_iou_loss(
        rois, bbox_pred, gt_box, overlap_threshold)
    jax.block_until_ready((loss, n_selected, refined_rois))

    # ---- pure-numpy reference (same conventions) for a sanity check --------
    r = np.asarray(rois, np.float64)
    p = np.asarray(bbox_pred, np.float64)
    g = np.asarray(gt_box, np.float64)
    iw = np.maximum(np.minimum(r[:, None, 2], g[None, :, 2])
                    - np.maximum(r[:, None, 0], g[None, :, 0]), 0.0)
    ih = np.maximum(np.minimum(r[:, None, 3], g[None, :, 3])
                    - np.maximum(r[:, None, 1], g[None, :, 1]), 0.0)
    inter = iw * ih
    area_r = (r[:, 2] - r[:, 0]) * (r[:, 3] - r[:, 1])
    area_g = (g[:, 2] - g[:, 0]) * (g[:, 3] - g[:, 1])
    iou = inter / (area_r[:, None] + area_g[None, :] - inter)
    ref_max_iou = iou.max(1)
    ref_max_idx = iou.argmax(1)
    m = ref_max_iou > overlap_threshold
    rs, ps, mg = r[m], p[m], g[ref_max_idx[m]]
    w = rs[:, 2] - rs[:, 0] + 1.0
    h = rs[:, 3] - rs[:, 1] + 1.0
    cx = rs[:, 0] + 0.5 * w
    cy = rs[:, 1] + 0.5 * h
    pcx = ps[:, 0] * w + cx
    pcy = ps[:, 1] * h + cy
    pw = np.exp(ps[:, 2]) * w
    ph = np.exp(ps[:, 3]) * h
    ref_refined = np.stack([pcx - 0.5 * pw, pcy - 0.5 * ph,
                            pcx + 0.5 * pw, pcy + 0.5 * ph], axis=1)
    iw2 = np.maximum(np.minimum(ref_refined[:, 2], mg[:, 2])
                     - np.maximum(ref_refined[:, 0], mg[:, 0]), 0.0)
    ih2 = np.maximum(np.minimum(ref_refined[:, 3], mg[:, 3])
                     - np.maximum(ref_refined[:, 1], mg[:, 1]), 0.0)
    inter2 = iw2 * ih2
    a_r = (ref_refined[:, 2] - ref_refined[:, 0]) * (ref_refined[:, 3] - ref_refined[:, 1])
    a_m = (mg[:, 2] - mg[:, 0]) * (mg[:, 3] - mg[:, 1])
    ref_loss = -np.log(inter2 / (a_r + a_m - inter2) + 0.1)

    n_sel = int(n_selected)
    assert n_sel == int(m.sum()), (n_sel, int(m.sum()))
    np.testing.assert_allclose(np.asarray(loss)[:n_sel], ref_loss,
                               rtol=2e-2, atol=2e-2)
    np.testing.assert_allclose(np.asarray(refined_rois)[:n_sel], ref_refined,
                               rtol=1e-4, atol=1e-3)
    print("KERNEL_OK")
</pallas_src>

<mosaic_0001>
module attributes {stable_mosaic.version = 11 : i64} {
  func.func @_ubr_iou_kernel(%arg0: i32, %arg1: memref<3x4xf32, #tpu.memory_space<smem>>, %arg2: memref<4x8x128xf32, #tpu.memory_space<vmem>>, %arg3: memref<4x8x128xf32, #tpu.memory_space<vmem>>, %arg4: memref<8x8x128xf32, #tpu.memory_space<vmem>>) attributes {dimension_semantics = [#tpu.dimension_semantics<parallel>], iteration_bounds = array<i64: 1>, scalar_prefetch = 0 : i64, scratch_operands = 0 : i64, tpu.core_type = #tpu.core_type<tc>, window_params = [{transform_indices = @transform_0, window_bounds = array<i64: 3, 4>}, {transform_indices = @transform_1, window_bounds = array<i64: 4, 8, 128>}, {transform_indices = @transform_2, window_bounds = array<i64: 4, 8, 128>}, {transform_indices = @transform_3, window_bounds = array<i64: 8, 8, 128>}]} {
    %c0 = arith.constant 0 : index
    %c0_0 = arith.constant 0 : index
    %c0_1 = arith.constant 0 : index
    %0 = vector.load %arg2[%c0, %c0_0, %c0_1] : memref<4x8x128xf32, #tpu.memory_space<vmem>>, vector<1x8x128xf32>
    %1 = vector.shape_cast %0 : vector<1x8x128xf32> to vector<8x128xf32>
    %c1 = arith.constant 1 : index
    %c0_2 = arith.constant 0 : index
    %c0_3 = arith.constant 0 : index
    %2 = vector.load %arg2[%c1, %c0_2, %c0_3] : memref<4x8x128xf32, #tpu.memory_space<vmem>>, vector<1x8x128xf32>
    %3 = vector.shape_cast %2 : vector<1x8x128xf32> to vector<8x128xf32>
    %c2 = arith.constant 2 : index
    %c0_4 = arith.constant 0 : index
    %c0_5 = arith.constant 0 : index
    %4 = vector.load %arg2[%c2, %c0_4, %c0_5] : memref<4x8x128xf32, #tpu.memory_space<vmem>>, vector<1x8x128xf32>
    %5 = vector.shape_cast %4 : vector<1x8x128xf32> to vector<8x128xf32>
    %c3 = arith.constant 3 : index
    %c0_6 = arith.constant 0 : index
    %c0_7 = arith.constant 0 : index
    %6 = vector.load %arg2[%c3, %c0_6, %c0_7] : memref<4x8x128xf32, #tpu.memory_space<vmem>>, vector<1x8x128xf32>
    %7 = vector.shape_cast %6 : vector<1x8x128xf32> to vector<8x128xf32>
    %8 = arith.subf %5, %1 : vector<8x128xf32>
    %9 = arith.subf %7, %3 : vector<8x128xf32>
    %10 = arith.mulf %8, %9 : vector<8x128xf32>
    %cst = arith.constant 0xFF800000 : f32
    %11 = vector.broadcast %cst : f32 to vector<8x128xf32>
    %cst_8 = arith.constant 0.000000e+00 : f32
    %12 = vector.broadcast %cst_8 : f32 to vector<8x128xf32>
    %cst_9 = arith.constant 0.000000e+00 : f32
    %13 = vector.broadcast %cst_9 : f32 to vector<8x128xf32>
    %cst_10 = arith.constant 0.000000e+00 : f32
    %14 = vector.broadcast %cst_10 : f32 to vector<8x128xf32>
    %cst_11 = arith.constant 0.000000e+00 : f32
    %15 = vector.broadcast %cst_11 : f32 to vector<8x128xf32>
    %cst_12 = arith.constant 0.000000e+00 : f32
    %16 = vector.broadcast %cst_12 : f32 to vector<8x128xf32>
    %c0_13 = arith.constant 0 : index
    %c0_14 = arith.constant 0 : index
    %17 = memref.load %arg1[%c0_13, %c0_14] : memref<3x4xf32, #tpu.memory_space<smem>>
    %c0_15 = arith.constant 0 : index
    %c1_16 = arith.constant 1 : index
    %18 = memref.load %arg1[%c0_15, %c1_16] : memref<3x4xf32, #tpu.memory_space<smem>>
    %c0_17 = arith.constant 0 : index
    %c2_18 = arith.constant 2 : index
    %19 = memref.load %arg1[%c0_17, %c2_18] : memref<3x4xf32, #tpu.memory_space<smem>>
    %c0_19 = arith.constant 0 : index
    %c3_20 = arith.constant 3 : index
    %20 = memref.load %arg1[%c0_19, %c3_20] : memref<3x4xf32, #tpu.memory_space<smem>>
    %21 = arith.subf %19, %17 : f32
    %22 = arith.subf %20, %18 : f32
    %23 = arith.mulf %21, %22 : f32
    %24 = vector.broadcast %19 : f32 to vector<8x128xf32>
    %25 = arith.minimumf %5, %24 : vector<8x128xf32>
    %26 = vector.broadcast %17 : f32 to vector<8x128xf32>
    %27 = arith.maximumf %1, %26 : vector<8x128xf32>
    %28 = arith.subf %25, %27 : vector<8x128xf32>
    %cst_21 = arith.constant 0.000000e+00 : f32
    %29 = vector.broadcast %cst_21 : f32 to vector<8x128xf32>
    %30 = arith.maximumf %28, %29 : vector<8x128xf32>
    %31 = vector.broadcast %20 : f32 to vector<8x128xf32>
    %32 = arith.minimumf %7, %31 : vector<8x128xf32>
    %33 = vector.broadcast %18 : f32 to vector<8x128xf32>
    %34 = arith.maximumf %3, %33 : vector<8x128xf32>
    %35 = arith.subf %32, %34 : vector<8x128xf32>
    %cst_22 = arith.constant 0.000000e+00 : f32
    %36 = vector.broadcast %cst_22 : f32 to vector<8x128xf32>
    %37 = arith.maximumf %35, %36 : vector<8x128xf32>
    %38 = arith.mulf %30, %37 : vector<8x128xf32>
    %39 = vector.broadcast %23 : f32 to vector<8x128xf32>
    %40 = arith.addf %10, %39 : vector<8x128xf32>
    %41 = arith.subf %40, %38 : vector<8x128xf32>
    %42 = arith.divf %38, %41 : vector<8x128xf32>
    %43 = arith.cmpf ogt, %42, %11 : vector<8x128xf32>
    %44 = arith.select %43, %42, %11 : vector<8x128xi1>, vector<8x128xf32>
    %cst_23 = arith.constant 0.000000e+00 : f32
    %45 = vector.broadcast %cst_23 : f32 to vector<8x128xf32>
    %46 = arith.select %43, %45, %12 : vector<8x128xi1>, vector<8x128xf32>
    %47 = vector.broadcast %17 : f32 to vector<8x128xf32>
    %48 = arith.select %43, %47, %13 : vector<8x128xi1>, vector<8x128xf32>
    %49 = vector.broadcast %18 : f32 to vector<8x128xf32>
    %50 = arith.select %43, %49, %14 : vector<8x128xi1>, vector<8x128xf32>
    %51 = vector.broadcast %19 : f32 to vector<8x128xf32>
    %52 = arith.select %43, %51, %15 : vector<8x128xi1>, vector<8x128xf32>
    %53 = vector.broadcast %20 : f32 to vector<8x128xf32>
    %54 = arith.select %43, %53, %16 : vector<8x128xi1>, vector<8x128xf32>
    %c1_24 = arith.constant 1 : index
    %c0_25 = arith.constant 0 : index
    %55 = memref.load %arg1[%c1_24, %c0_25] : memref<3x4xf32, #tpu.memory_space<smem>>
    %c1_26 = arith.constant 1 : index
    %c1_27 = arith.constant 1 : index
    %56 = memref.load %arg1[%c1_26, %c1_27] : memref<3x4xf32, #tpu.memory_space<smem>>
    %c1_28 = arith.constant 1 : index
    %c2_29 = arith.constant 2 : index
    %57 = memref.load %arg1[%c1_28, %c2_29] : memref<3x4xf32, #tpu.memory_space<smem>>
    %c1_30 = arith.constant 1 : index
    %c3_31 = arith.constant 3 : index
    %58 = memref.load %arg1[%c1_30, %c3_31] : memref<3x4xf32, #tpu.memory_space<smem>>
    %59 = arith.subf %57, %55 : f32
    %60 = arith.subf %58, %56 : f32
    %61 = arith.mulf %59, %60 : f32
    %62 = vector.broadcast %57 : f32 to vector<8x128xf32>
    %63 = arith.minimumf %5, %62 : vector<8x128xf32>
    %64 = vector.broadcast %55 : f32 to vector<8x128xf32>
    %65 = arith.maximumf %1, %64 : vector<8x128xf32>
    %66 = arith.subf %63, %65 : vector<8x128xf32>
    %cst_32 = arith.constant 0.000000e+00 : f32
    %67 = vector.broadcast %cst_32 : f32 to vector<8x128xf32>
    %68 = arith.maximumf %66, %67 : vector<8x128xf32>
    %69 = vector.broadcast %58 : f32 to vector<8x128xf32>
    %70 = arith.minimumf %7, %69 : vector<8x128xf32>
    %71 = vector.broadcast %56 : f32 to vector<8x128xf32>
    %72 = arith.maximumf %3, %71 : vector<8x128xf32>
    %73 = arith.subf %70, %72 : vector<8x128xf32>
    %cst_33 = arith.constant 0.000000e+00 : f32
    %74 = vector.broadcast %cst_33 : f32 to vector<8x128xf32>
    %75 = arith.maximumf %73, %74 : vector<8x128xf32>
    %76 = arith.mulf %68, %75 : vector<8x128xf32>
    %77 = vector.broadcast %61 : f32 to vector<8x128xf32>
    %78 = arith.addf %10, %77 : vector<8x128xf32>
    %79 = arith.subf %78, %76 : vector<8x128xf32>
    %80 = arith.divf %76, %79 : vector<8x128xf32>
    %81 = arith.cmpf ogt, %80, %44 : vector<8x128xf32>
    %82 = arith.select %81, %80, %44 : vector<8x128xi1>, vector<8x128xf32>
    %cst_34 = arith.constant 1.000000e+00 : f32
    %83 = vector.broadcast %cst_34 : f32 to vector<8x128xf32>
    %84 = arith.select %81, %83, %46 : vector<8x128xi1>, vector<8x128xf32>
    %85 = vector.broadcast %55 : f32 to vector<8x128xf32>
    %86 = arith.select %81, %85, %48 : vector<8x128xi1>, vector<8x128xf32>
    %87 = vector.broadcast %56 : f32 to vector<8x128xf32>
    %88 = arith.select %81, %87, %50 : vector<8x128xi1>, vector<8x128xf32>
    %89 = vector.broadcast %57 : f32 to vector<8x128xf32>
    %90 = arith.select %81, %89, %52 : vector<8x128xi1>, vector<8x128xf32>
    %91 = vector.broadcast %58 : f32 to vector<8x128xf32>
    %92 = arith.select %81, %91, %54 : vector<8x128xi1>, vector<8x128xf32>
    %c2_35 = arith.constant 2 : index
    %c0_36 = arith.constant 0 : index
    %93 = memref.load %arg1[%c2_35, %c0_36] : memref<3x4xf32, #tpu.memory_space<smem>>
    %c2_37 = arith.constant 2 : index
    %c1_38 = arith.constant 1 : index
    %94 = memref.load %arg1[%c2_37, %c1_38] : memref<3x4xf32, #tpu.memory_space<smem>>
    %c2_39 = arith.constant 2 : index
    %c2_40 = arith.constant 2 : index
    %95 = memref.load %arg1[%c2_39, %c2_40] : memref<3x4xf32, #tpu.memory_space<smem>>
    %c2_41 = arith.constant 2 : index
    %c3_42 = arith.constant 3 : index
    %96 = memref.load %arg1[%c2_41, %c3_42] : memref<3x4xf32, #tpu.memory_space<smem>>
    %97 = arith.subf %95, %93 : f32
    %98 = arith.subf %96, %94 : f32
    %99 = arith.mulf %97, %98 : f32
    %100 = vector.broadcast %95 : f32 to vector<8x128xf32>
    %101 = arith.minimumf %5, %100 : vector<8x128xf32>
    %102 = vector.broadcast %93 : f32 to vector<8x128xf32>
    %103 = arith.maximumf %1, %102 : vector<8x128xf32>
    %104 = arith.subf %101, %103 : vector<8x128xf32>
    %cst_43 = arith.constant 0.000000e+00 : f32
    %105 = vector.broadcast %cst_43 : f32 to vector<8x128xf32>
    %106 = arith.maximumf %104, %105 : vector<8x128xf32>
    %107 = vector.broadcast %96 : f32 to vector<8x128xf32>
    %108 = arith.minimumf %7, %107 : vector<8x128xf32>
    %109 = vector.broadcast %94 : f32 to vector<8x128xf32>
    %110 = arith.maximumf %3, %109 : vector<8x128xf32>
    %111 = arith.subf %108, %110 : vector<8x128xf32>
    %cst_44 = arith.constant 0.000000e+00 : f32
    %112 = vector.broadcast %cst_44 : f32 to vector<8x128xf32>
    %113 = arith.maximumf %111, %112 : vector<8x128xf32>
    %114 = arith.mulf %106, %113 : vector<8x128xf32>
    %115 = vector.broadcast %99 : f32 to vector<8x128xf32>
    %116 = arith.addf %10, %115 : vector<8x128xf32>
    %117 = arith.subf %116, %114 : vector<8x128xf32>
    %118 = arith.divf %114, %117 : vector<8x128xf32>
    %119 = arith.cmpf ogt, %118, %82 : vector<8x128xf32>
    %120 = arith.select %119, %118, %82 : vector<8x128xi1>, vector<8x128xf32>
    %cst_45 = arith.constant 2.000000e+00 : f32
    %121 = vector.broadcast %cst_45 : f32 to vector<8x128xf32>
    %122 = arith.select %119, %121, %84 : vector<8x128xi1>, vector<8x128xf32>
    %123 = vector.broadcast %93 : f32 to vector<8x128xf32>
    %124 = arith.select %119, %123, %86 : vector<8x128xi1>, vector<8x128xf32>
    %125 = vector.broadcast %94 : f32 to vector<8x128xf32>
    %126 = arith.select %119, %125, %88 : vector<8x128xi1>, vector<8x128xf32>
    %127 = vector.broadcast %95 : f32 to vector<8x128xf32>
    %128 = arith.select %119, %127, %90 : vector<8x128xi1>, vector<8x128xf32>
    %129 = vector.broadcast %96 : f32 to vector<8x128xf32>
    %130 = arith.select %119, %129, %92 : vector<8x128xi1>, vector<8x128xf32>
    %131 = arith.subf %5, %1 : vector<8x128xf32>
    %cst_46 = arith.constant 1.000000e+00 : f32
    %132 = vector.broadcast %cst_46 : f32 to vector<8x128xf32>
    %133 = arith.addf %131, %132 : vector<8x128xf32>
    %134 = arith.subf %7, %3 : vector<8x128xf32>
    %cst_47 = arith.constant 1.000000e+00 : f32
    %135 = vector.broadcast %cst_47 : f32 to vector<8x128xf32>
    %136 = arith.addf %134, %135 : vector<8x128xf32>
    %cst_48 = arith.constant 5.000000e-01 : f32
    %137 = vector.broadcast %cst_48 : f32 to vector<8x128xf32>
    %138 = arith.mulf %137, %133 : vector<8x128xf32>
    %139 = arith.addf %1, %138 : vector<8x128xf32>
    %cst_49 = arith.constant 5.000000e-01 : f32
    %140 = vector.broadcast %cst_49 : f32 to vector<8x128xf32>
    %141 = arith.mulf %140, %136 : vector<8x128xf32>
    %142 = arith.addf %3, %141 : vector<8x128xf32>
    %c0_50 = arith.constant 0 : index
    %c0_51 = arith.constant 0 : index
    %c0_52 = arith.constant 0 : index
    %143 = vector.load %arg3[%c0_50, %c0_51, %c0_52] : memref<4x8x128xf32, #tpu.memory_space<vmem>>, vector<1x8x128xf32>
    %144 = vector.shape_cast %143 : vector<1x8x128xf32> to vector<8x128xf32>
    %c1_53 = arith.constant 1 : index
    %c0_54 = arith.constant 0 : index
    %c0_55 = arith.constant 0 : index
    %145 = vector.load %arg3[%c1_53, %c0_54, %c0_55] : memref<4x8x128xf32, #tpu.memory_space<vmem>>, vector<1x8x128xf32>
    %146 = vector.shape_cast %145 : vector<1x8x128xf32> to vector<8x128xf32>
    %c2_56 = arith.constant 2 : index
    %c0_57 = arith.constant 0 : index
    %c0_58 = arith.constant 0 : index
    %147 = vector.load %arg3[%c2_56, %c0_57, %c0_58] : memref<4x8x128xf32, #tpu.memory_space<vmem>>, vector<1x8x128xf32>
    %148 = vector.shape_cast %147 : vector<1x8x128xf32> to vector<8x128xf32>
    %c3_59 = arith.constant 3 : index
    %c0_60 = arith.constant 0 : index
    %c0_61 = arith.constant 0 : index
    %149 = vector.load %arg3[%c3_59, %c0_60, %c0_61] : memref<4x8x128xf32, #tpu.memory_space<vmem>>, vector<1x8x128xf32>
    %150 = vector.shape_cast %149 : vector<1x8x128xf32> to vector<8x128xf32>
    %151 = arith.mulf %144, %133 : vector<8x128xf32>
    %152 = arith.addf %151, %139 : vector<8x128xf32>
    %153 = arith.mulf %146, %136 : vector<8x128xf32>
    %154 = arith.addf %153, %142 : vector<8x128xf32>
    %155 = math.exp %148 : vector<8x128xf32>
    %156 = arith.mulf %155, %133 : vector<8x128xf32>
    %157 = math.exp %150 : vector<8x128xf32>
    %158 = arith.mulf %157, %136 : vector<8x128xf32>
    %cst_62 = arith.constant 5.000000e-01 : f32
    %159 = vector.broadcast %cst_62 : f32 to vector<8x128xf32>
    %160 = arith.mulf %159, %156 : vector<8x128xf32>
    %161 = arith.subf %152, %160 : vector<8x128xf32>
    %cst_63 = arith.constant 5.000000e-01 : f32
    %162 = vector.broadcast %cst_63 : f32 to vector<8x128xf32>
    %163 = arith.mulf %162, %158 : vector<8x128xf32>
    %164 = arith.subf %154, %163 : vector<8x128xf32>
    %cst_64 = arith.constant 5.000000e-01 : f32
    %165 = vector.broadcast %cst_64 : f32 to vector<8x128xf32>
    %166 = arith.mulf %165, %156 : vector<8x128xf32>
    %167 = arith.addf %152, %166 : vector<8x128xf32>
    %cst_65 = arith.constant 5.000000e-01 : f32
    %168 = vector.broadcast %cst_65 : f32 to vector<8x128xf32>
    %169 = arith.mulf %168, %158 : vector<8x128xf32>
    %170 = arith.addf %154, %169 : vector<8x128xf32>
    %171 = arith.minimumf %167, %128 : vector<8x128xf32>
    %172 = arith.maximumf %161, %124 : vector<8x128xf32>
    %173 = arith.subf %171, %172 : vector<8x128xf32>
    %cst_66 = arith.constant 0.000000e+00 : f32
    %174 = vector.broadcast %cst_66 : f32 to vector<8x128xf32>
    %175 = arith.maximumf %173, %174 : vector<8x128xf32>
    %176 = arith.minimumf %170, %130 : vector<8x128xf32>
    %177 = arith.maximumf %164, %126 : vector<8x128xf32>
    %178 = arith.subf %176, %177 : vector<8x128xf32>
    %cst_67 = arith.constant 0.000000e+00 : f32
    %179 = vector.broadcast %cst_67 : f32 to vector<8x128xf32>
    %180 = arith.maximumf %178, %179 : vector<8x128xf32>
    %181 = arith.mulf %175, %180 : vector<8x128xf32>
    %182 = arith.subf %167, %161 : vector<8x128xf32>
    %183 = arith.subf %170, %164 : vector<8x128xf32>
    %184 = arith.mulf %182, %183 : vector<8x128xf32>
    %185 = arith.subf %128, %124 : vector<8x128xf32>
    %186 = arith.subf %130, %126 : vector<8x128xf32>
    %187 = arith.mulf %185, %186 : vector<8x128xf32>
    %188 = arith.addf %184, %187 : vector<8x128xf32>
    %189 = arith.subf %188, %181 : vector<8x128xf32>
    %190 = tpu.reciprocal %189 {approx = true} : vector<8x128xf32> -> vector<8x128xf32>
    %191 = arith.mulf %181, %190 : vector<8x128xf32>
    %cst_68 = arith.constant 1.000000e-01 : f32
    %192 = vector.broadcast %cst_68 : f32 to vector<8x128xf32>
    %193 = arith.addf %191, %192 : vector<8x128xf32>
    %194 = math.log %193 : vector<8x128xf32>
    %cst_69 = arith.constant 0.000000e+00 : f32
    %195 = vector.broadcast %cst_69 : f32 to vector<8x128xf32>
    %196 = arith.subf %195, %194 : vector<8x128xf32>
    %cst_70 = arith.constant 3.000000e-01 : f32
    %197 = vector.broadcast %cst_70 : f32 to vector<8x128xf32>
    %198 = arith.cmpf ogt, %120, %197 : vector<8x128xf32>
    %199 = arith.extui %198 : vector<8x128xi1> to vector<8x128xi32>
    %200 = arith.sitofp %199 : vector<8x128xi32> to vector<8x128xf32>
    %c0_71 = arith.constant 0 : index
    %c0_72 = arith.constant 0 : index
    %c0_73 = arith.constant 0 : index
    %201 = vector.load %arg4[%c0_71, %c0_72, %c0_73] : memref<8x8x128xf32, #tpu.memory_space<vmem>>, vector<1x8x128xf32>
    %202 = vector.shape_cast %201 : vector<1x8x128xf32> to vector<8x128xf32>
    %203 = vector.shape_cast %161 : vector<8x128xf32> to vector<1x8x128xf32>
    tpu.vector_store %arg4[%c0_71, %c0_72, %c0_73], %203 {strides = array<i32>} : memref<8x8x128xf32, #tpu.memory_space<vmem>>, vector<1x8x128xf32>,
    %c1_74 = arith.constant 1 : index
    %c0_75 = arith.constant 0 : index
    %c0_76 = arith.constant 0 : index
    %204 = vector.load %arg4[%c1_74, %c0_75, %c0_76] : memref<8x8x128xf32, #tpu.memory_space<vmem>>, vector<1x8x128xf32>
    %205 = vector.shape_cast %204 : vector<1x8x128xf32> to vector<8x128xf32>
    %206 = vector.shape_cast %164 : vector<8x128xf32> to vector<1x8x128xf32>
    tpu.vector_store %arg4[%c1_74, %c0_75, %c0_76], %206 {strides = array<i32>} : memref<8x8x128xf32, #tpu.memory_space<vmem>>, vector<1x8x128xf32>,
    %c2_77 = arith.constant 2 : index
    %c0_78 = arith.constant 0 : index
    %c0_79 = arith.constant 0 : index
    %207 = vector.load %arg4[%c2_77, %c0_78, %c0_79] : memref<8x8x128xf32, #tpu.memory_space<vmem>>, vector<1x8x128xf32>
    %208 = vector.shape_cast %207 : vector<1x8x128xf32> to vector<8x128xf32>
    %209 = vector.shape_cast %167 : vector<8x128xf32> to vector<1x8x128xf32>
    tpu.vector_store %arg4[%c2_77, %c0_78, %c0_79], %209 {strides = array<i32>} : memref<8x8x128xf32, #tpu.memory_space<vmem>>, vector<1x8x128xf32>,
    %c3_80 = arith.constant 3 : index
    %c0_81 = arith.constant 0 : index
    %c0_82 = arith.constant 0 : index
    %210 = vector.load %arg4[%c3_80, %c0_81, %c0_82] : memref<8x8x128xf32, #tpu.memory_space<vmem>>, vector<1x8x128xf32>
    %211 = vector.shape_cast %210 : vector<1x8x128xf32> to vector<8x128xf32>
    %212 = vector.shape_cast %170 : vector<8x128xf32> to vector<1x8x128xf32>
    tpu.vector_store %arg4[%c3_80, %c0_81, %c0_82], %212 {strides = array<i32>} : memref<8x8x128xf32, #tpu.memory_space<vmem>>, vector<1x8x128xf32>,
    %c4 = arith.constant 4 : index
    %c0_83 = arith.constant 0 : index
    %c0_84 = arith.constant 0 : index
    %213 = vector.load %arg4[%c4, %c0_83, %c0_84] : memref<8x8x128xf32, #tpu.memory_space<vmem>>, vector<1x8x128xf32>
    %214 = vector.shape_cast %213 : vector<1x8x128xf32> to vector<8x128xf32>
    %215 = vector.shape_cast %120 : vector<8x128xf32> to vector<1x8x128xf32>
    tpu.vector_store %arg4[%c4, %c0_83, %c0_84], %215 {strides = array<i32>} : memref<8x8x128xf32, #tpu.memory_space<vmem>>, vector<1x8x128xf32>,
    %c5 = arith.constant 5 : index
    %c0_85 = arith.constant 0 : index
    %c0_86 = arith.constant 0 : index
    %216 = vector.load %arg4[%c5, %c0_85, %c0_86] : memref<8x8x128xf32, #tpu.memory_space<vmem>>, vector<1x8x128xf32>
    %217 = vector.shape_cast %216 : vector<1x8x128xf32> to vector<8x128xf32>
    %218 = vector.shape_cast %196 : vector<8x128xf32> to vector<1x8x128xf32>
    tpu.vector_store %arg4[%c5, %c0_85, %c0_86], %218 {strides = array<i32>} : memref<8x8x128xf32, #tpu.memory_space<vmem>>, vector<1x8x128xf32>,
    %c6 = arith.constant 6 : index
    %c0_87 = arith.constant 0 : index
    %c0_88 = arith.constant 0 : index
    %219 = vector.load %arg4[%c6, %c0_87, %c0_88] : memref<8x8x128xf32, #tpu.memory_space<vmem>>, vector<1x8x128xf32>
    %220 = vector.shape_cast %219 : vector<1x8x128xf32> to vector<8x128xf32>
    %221 = vector.shape_cast %122 : vector<8x128xf32> to vector<1x8x128xf32>
    tpu.vector_store %arg4[%c6, %c0_87, %c0_88], %221 {strides = array<i32>} : memref<8x8x128xf32, #tpu.memory_space<vmem>>, vector<1x8x128xf32>,
    %c7 = arith.constant 7 : index
    %c0_89 = arith.constant 0 : index
    %c0_90 = arith.constant 0 : index
    %222 = vector.load %arg4[%c7, %c0_89, %c0_90] : memref<8x8x128xf32, #tpu.memory_space<vmem>>, vector<1x8x128xf32>
    %223 = vector.shape_cast %222 : vector<1x8x128xf32> to vector<8x128xf32>
    %224 = vector.shape_cast %200 : vector<8x128xf32> to vector<1x8x128xf32>
    tpu.vector_store %arg4[%c7, %c0_89, %c0_90], %224 {strides = array<i32>} : memref<8x8x128xf32, #tpu.memory_space<vmem>>, vector<1x8x128xf32>,
    return
  }
  func.func @transform_0(%arg0: i32) -> (i32, i32) {
    %c0_i32 = arith.constant 0 : i32
    %c0_i32_0 = arith.constant 0 : i32
    %c0_i32_1 = arith.constant 0 : i32
    return %c0_i32, %c0_i32_0 : i32, i32
  }
  func.func @transform_1(%arg0: i32) -> (i32, i32, i32) {
    %c0_i32 = arith.constant 0 : i32
    %c0_i32_0 = arith.constant 0 : i32
    %c0_i32_1 = arith.constant 0 : i32
    return %c0_i32, %c0_i32_0, %arg0 : i32, i32, i32
  }
  func.func @transform_2(%arg0: i32) -> (i32, i32, i32) {
    %c0_i32 = arith.constant 0 : i32
    %c0_i32_0 = arith.constant 0 : i32
    %c0_i32_1 = arith.constant 0 : i32
    return %c0_i32, %c0_i32_0, %arg0 : i32, i32, i32
  }
  func.func @transform_3(%arg0: i32) -> (i32, i32, i32) {
    %c0_i32 = arith.constant 0 : i32
    %c0_i32_0 = arith.constant 0 : i32
    %c0_i32_1 = arith.constant 0 : i32
    return %c0_i32, %c0_i32_0, %arg0 : i32, i32, i32
  }
}

</mosaic_0001>

<bundles_post_ra>
// kernel: _ubr_forward.1
= control target key start
LH: loop header
LB: loop body
LE: loop exit
PB: predicated region body
PF: predicated region fallthrough
CT: control target
= control target key end

     0   :  { %8 = vsyncpa [#allocation3], 0  ;;  %s301_s15 = smov [#allocation2]   ;;  %s558_s0 = inlined_call_operand.vmem [shape: f32[3,4], index: 0, kind: input, shape index: {}]   ;;  %s559_s1 = inlined_call_operand.vmem [shape: f32[4,8,128], index: 1, kind: input, shape index: {}]   ;;  %s560_s2 = inlined_call_operand.vmem [shape: f32[4,8,128], index: 2, kind: input, shape index: {}]   ;;  %s561_s3 = inlined_call_operand.vmem [shape: f32[8,8,128], index: 3, kind: output, shape index: {}]  }
   0x1   :  { %s14_s14 = sshll.u32 %s558_s0, 4  ;;  %s15_s14 = int_to_ptr.vmem [resolvable:$true] %s14_s14 }
   0x2   :  { %17 = dma.vmem_to_smem %s15_s14, 64, %s301_s15, [#allocation3]  }
   0x3   :  { %299 = dma.done.wait [#allocation3], 64  }
   0x4   :  { %300 = vsyncadd [#allocation3], 4294967232 }
   0x5   :  { %26 = sfence }
   0x6   :  { %v329_v0 = vld [vmem:[%s559_s1] sm:$0xff]  ;;  %v334_v1 = vld [vmem:[%s559_s1 + $0x10] sm:$0xff]  ;;  %s336_s20 = sld [smem:[#allocation2]]  ;;  %v346_v4 = vld [vmem:[%s559_s1 + $0x8] sm:$0xff] }
   0x7   :  { %v34_v2 = vsub.f32 %v334_v1, %v329_v0  ;;  %v261_v3 = vld [vmem:[%s560_s2 + $0x10] sm:$0xff]  ;;  %v351_v5 = vld [vmem:[%s559_s1 + $0x18] sm:$0xff]  ;;  %s353_s26 = sld [smem:[#allocation2 + $0x1]]  ;;  %v177_v6 = vld [vmem:[%s560_s2] sm:$0xff] }
   0x8   :  { %v188_v7 = vmul.f32 1.442695, %v261_v3  ;;  %v35_v8 = vsub.f32 %v351_v5, %v346_v4  ;;  %v262_v9 = vld [vmem:[%s560_s2 + $0x18] sm:$0xff]  ;;  %s363_s4 = sld [smem:[#allocation2 + $0x2]]  ;;  %v260_v11 = vld [vmem:[%s560_s2 + $0x8] sm:$0xff] }
   0x9   :  { %v171_v10 = vadd.f32 1.0, %v34_v2  ;;  %v191_v12 = vmul.f32 1.442695, %v262_v9  ;;  %s368_s6 = sld [smem:[#allocation2 + $0x3]] }
   0xa   :  { %273 = vpow2.f32 %v188_v7  ;;  %v172_v13 = vadd.f32 1.0, %v35_v8  ;;  %s370_s7 = sld [smem:[#allocation2 + $0x80]]  ;;  %v391_v25 = vmul.f32 %v35_v8, %v34_v2 }
   0xb   :  { %v173_v14 = vmul.f32 0.5, %v171_v10  ;;  %275 = vpow2.f32 %v191_v12  ;;  %s372_s8 = sld [smem:[#allocation2 + $0x81]]  ;;  %v184_v15 = vmul.f32 %v177_v6, %v171_v10 }
   0xc   :  { %v175_v16 = vmul.f32 0.5, %v172_v13  ;;  %v186_v17 = vmul.f32 %v260_v11, %v172_v13  ;;  %v46_v18 = vstv %s336_s20  ;;  %s375_s2 = sld [smem:[#allocation2 + $0x82]] }
   0xd   :  { %v174_v19 = vadd.f32 %v173_v14, %v329_v0  ;;  %v47_v20 = vmax.f32 %v329_v0, %v46_v18  ;;  %v52_v21 = vstv %s353_s26  ;;  %s382_s9 = sld [smem:[#allocation2 + $0x83]] }
   0xe   :  { %v176_v22 = vadd.f32 %v346_v4, %v175_v16  ;;  %s41_s10 = ssub.f32 %s363_s4, %s336_s20  ;;  %v44_v23 = vstv %s363_s4  ;;  %v53_v24 = vmax.f32 %v346_v4, %v52_v21 }
   0xf   :  { %s42_s11 = ssub.f32 %s368_s6, %s353_s26  ;;  %v45_v26 = vmin.f32 %v334_v1, %v44_v23  ;;  %v50_v27 = vstv %s368_s6  ;;  %v185_v29 = vadd.f32 %v184_v15, %v174_v19 }
  0x10   :  { %v274_v28 = vpop.eup %273  ;;  %v187_v30 = vadd.f32 %v186_v17, %v176_v22  ;;  %v51_v31 = vmin.f32 %v351_v5, %v50_v27  ;;  %v90_v32 = vstv %s370_s7  ;;  %s403_s12 = sld [smem:[#allocation2 + $0x100]] }
  0x11   :  { %v276_v33 = vpop.eup %275  ;;  %v190_v34 = vmul.f32 %v274_v28, %v171_v10  ;;  %s43_s13 = smul.f32 %s42_s11, %s41_s10  ;;  %v48_v35 = vsub.f32 %v45_v26, %v47_v20  ;;  %v91_v36 = vmax.f32 %v329_v0, %v90_v32  ;;  %v96_v37 = vstv %s372_s8  ;;  %s409_s14 = sld [smem:[#allocation2 + $0x101]] }
  0x12   :  { %v193_v38 = vmul.f32 %v276_v33, %v172_v13  ;;  %v54_v39 = vsub.f32 %v51_v31, %v53_v24  ;;  %s85_s15 = ssub.f32 %s375_s2, %s370_s7  ;;  %v88_v40 = vstv %s375_s2  ;;  %v97_v41 = vmax.f32 %v346_v4, %v96_v37 }
  0x13   :  { %v194_v42 = vmul.f32 0.5, %v190_v34  ;;  %v49_v43 = vmax.f32 %v48_v35, 0.0  ;;  %v57_v44 = vstv %s43_s13  ;;  %s86_s16 = ssub.f32 %s382_s9, %s372_s8  ;;  %v89_v45 = vmin.f32 %v334_v1, %v88_v40 }
  0x14   :  { %v196_v46 = vmul.f32 0.5, %v193_v38  ;;  %v55_v47 = vmax.f32 %v54_v39, 0.0  ;;  %v58_v48 = vadd.f32 %v57_v44, %v391_v25  ;;  %v94_v49 = vstv %s382_s9  ;;  %s424_s17 = sld [smem:[#allocation2 + $0x102]] }
  0x15   :  { %v426_v50 = vsub.f32 %v185_v29, %v194_v42  ;;  %s87_s18 = smul.f32 %s86_s16, %s85_s15  ;;  %v92_v51 = vsub.f32 %v89_v45, %v91_v36  ;;  %v95_v52 = vmin.f32 %v351_v5, %v94_v49  ;;  %s431_s19 = sld [smem:[#allocation2 + $0x103]]  ;;  %v435_v54 = vadd.f32 %v194_v42, %v185_v29 }
  0x16   :  { %v433_v53 = vsub.f32 %v187_v30, %v196_v46  ;;  %v56_v55 = vmul.f32 %v55_v47, %v49_v43  ;;  %v135_v59 = vstv %s403_s12  ;;  %v446_v60 = vadd.f32 %v196_v46, %v187_v30 }
  0x17   :  { %226 = vst [vmem:[%s561_s3] sm:$0xff] %v426_v50  ;;  %v93_v56 = vmax.f32 %v92_v51, 0.0  ;;  %v98_v57 = vsub.f32 %v95_v52, %v97_v41  ;;  %v101_v58 = vstv %s87_s18  ;;  %v141_v2 = vstv %s409_s14 }
  0x18   :  { %264 = vst [vmem:[%s561_s3 + $0x8] sm:$0xff] %v433_v53  ;;  %v59_v61 = vsub.f32 %v58_v48, %v56_v55  ;;  %v102_v63 = vadd.f32 %v101_v58, %v391_v25  ;;  %v136_v3 = vmax.f32 %v329_v0, %v135_v59  ;;  %v142_v11 = vmax.f32 %v346_v4, %v141_v2 }
  0x19   :  { %265 = vst [vmem:[%s561_s3 + $0x10] sm:$0xff] %v435_v54  ;;  %v99_v62 = vmax.f32 %v98_v57, 0.0 }
  0x1a   :  { %266 = vst [vmem:[%s561_s3 + $0x18] sm:$0xff] %v446_v60  ;;  %277 = vrcp.f32 %v59_v61  ;;  %s130_s29 = ssub.f32 %s424_s17, %s403_s12  ;;  %v133_v7 = vstv %s424_s17  ;;  %v71_v20 = vand.u32 2147483648, %v59_v61  ;;  %vm65_vm0 = vweird.f32 %v59_v61 }
  0x1b   :  { %v100_v6 = vmul.f32 %v99_v62, %v93_v56  ;;  %s131_s30 = ssub.f32 %s431_s19, %s409_s14  ;;  %v139_v8 = vstv %s431_s19  ;;  %v134_v9 = vmin.f32 %v334_v1, %v133_v7 }
  0x1c   :  { %v140_v10 = vmin.f32 %v351_v5, %v139_v8  ;;  %v69_v5 = vand.u32 2147483647, %v59_v61  ;;  %v72_v29 = vor.u32 1.1754944e-38, %v71_v20 }
  0x1d   :  { %v103_v12 = vsub.f32 %v102_v63, %v100_v6  ;;  %s132_s1 = smul.f32 %s131_s30, %s130_s29  ;;  %v137_v13 = vsub.f32 %v134_v9, %v136_v3  ;;  %v210_v9 = vsub.f32 %v446_v60, %v433_v53 }
  0x1e   :  { %v143_v14 = vsub.f32 %v140_v10, %v142_v11  ;;  %vm70_vm3 = vcmp.eq.f32.partialorder %v69_v5, 8.507059e+37 }
  0x1f   :  { %279 = vrcp.f32 %v103_v12  ;;  %v138_v0 = vmax.f32 %v137_v13, 0.0  ;;  %v146_v17 = vstv %s132_s1  ;;  %v115_v33 = vand.u32 2147483648, %v103_v12 }
  0x20   :  { %v278_v15 = vpop.eup %277  ;;  %v144_v16 = vmax.f32 %v143_v14, 0.0  ;;  %v147_v1 = vadd.f32 %v146_v17, %v391_v25  ;;  %vm109_vm4 = vweird.f32 %v103_v12  ;;  %v113_v35 = vand.u32 2147483647, %v103_v12 }
  0x21   :  { %v61_v19 = vmul.f32 %v278_v15, %v59_v61  ;;  %vm66_vm1 = vweird.f32 %v278_v15  ;;  %v116_v41 = vor.u32 1.1754944e-38, %v115_v33 }
  0x22   :  { %v145_v22 = vmul.f32 %v144_v16, %v138_v0  ;;  %vm67_vm2 = vmor %vm65_vm0, %vm66_vm1  ;;  %vm114_vm7 = vcmp.eq.f32.partialorder %v113_v35, 8.507059e+37 }
  0x23   :  { %v62_v24 = vsub.f32 1.0, %v61_v19 }
  0x24   :  { %v148_v26 = vsub.f32 %v147_v1, %v145_v22  ;;  %v302_v1 = vmov 0.0  }
  0x25   :  { %v280_v4 = vpop.eup %279  ;;  %v63_v28 = vmul.f32 %v278_v15, %v62_v24 }
  0x26   :  { %v105_v30 = vmul.f32 %v280_v4, %v103_v12  ;;  %281 = vrcp.f32 %v148_v26  ;;  %vm110_vm5 = vweird.f32 %v280_v4  ;;  %vm154_vm9 = vweird.f32 %v148_v26 }
  0x27   :  { %v64_v31 = vadd.f32 %v278_v15, %v63_v28  ;;  %vm111_vm6 = vmor %vm109_vm4, %vm110_vm5  ;;  %v160_v46 = vand.u32 2147483648, %v148_v26  ;;  %v158_v51 = vand.u32 2147483647, %v148_v26 }
  0x28   :  { %v106_v34 = vsub.f32 1.0, %v105_v30 }
  0x29   :  { %v68_v36 = vsel %vm67_vm2, %v278_v15, %v64_v31  ;;  %v161_v57 = vor.u32 1.1754944e-38, %v160_v46  ;;  %vm159_vm13 = vcmp.eq.f32.partialorder %v158_v51, 8.507059e+37 }
  0x2a   :  { %v73_v25 = vsel %vm70_vm3, %v72_v29, %v68_v36  ;;  %v107_v38 = vmul.f32 %v280_v4, %v106_v34 }
  0x2b   :  { %v74_v39 = vmul.f32 %v73_v25, %v56_v55 }
  0x2c   :  { %v282_v42 = vpop.eup %281  ;;  %v108_v43 = vadd.f32 %v280_v4, %v107_v38 }
  0x2d   :  { %vm75_vm8 = vcmp.gt.f32.partialorder %v74_v39, -inf  ;;  %v150_v44 = vmul.f32 %v282_v42, %v148_v26  ;;  %vm155_vm10 = vweird.f32 %v282_v42 }
  0x2e   :  { %v112_v45 = vsel %vm111_vm6, %v280_v4, %v108_v43  ;;  %v76_v52 = vsel %vm75_vm8, %v74_v39, -inf  ;;  %vm156_vm11 = vmor %vm154_vm9, %vm155_vm10  ;;  %v77_v62 = vsel %vm75_vm8, %v46_v18, 0.0  ;;  %v78_v63 = vsel %vm75_vm8, %v52_v21, 0.0 }
  0x2f   :  { %v117_v47 = vsel %vm114_vm7, %v116_v41, %v112_v45  ;;  %v151_v48 = vsub.f32 1.0, %v150_v44  ;;  %v79_v3 = vsel %vm75_vm8, %v44_v23, 0.0  ;;  %v80_v18 = vsel %vm75_vm8, %v50_v27, 0.0 }
  0x30   :  { %v118_v55 = vmul.f32 %v117_v47, %v100_v6  ;;  %v209_v6 = vsub.f32 %v435_v54, %v426_v50 }
  0x31   :  { %v152_v56 = vmul.f32 %v282_v42, %v151_v48 }
  0x32   :  { %vm478_vm12 = vcmp.gt.f32.partialorder %v118_v55, %v76_v52  ;;  %v211_v15 = vmul.f32 %v210_v9, %v209_v6 }
  0x33   :  { %v153_v61 = vadd.f32 %v282_v42, %v152_v56  ;;  %v120_v21 = vsel %vm478_vm12, %v118_v55, %v76_v52  ;;  %v122_v23 = vsel %vm478_vm12, %v90_v32, %v77_v62  ;;  %v123_v13 = vsel %vm478_vm12, %v96_v37, %v78_v63 }
  0x34   :  { %v124_v14 = vsel %vm478_vm12, %v88_v40, %v79_v3  ;;  %v125_v27 = vsel %vm478_vm12, %v94_v49, %v80_v18 }
  0x35   :  { %v157_v10 = vsel %vm156_vm11, %v282_v42, %v153_v61 }
  0x36   :  { %v162_v11 = vsel %vm159_vm13, %v161_v57, %v157_v10 }
  0x37   :  { %v163_v12 = vmul.f32 %v162_v11, %v145_v22 }
  0x39   :  { %vm516_vm14 = vcmp.gt.f32.partialorder %v163_v12, %v120_v21 }
  0x3a   :  { %v165_v32 = vsel %vm516_vm14, %v163_v12, %v120_v21  ;;  %v167_v37 = vsel %vm516_vm14, %v135_v59, %v122_v23  ;;  %v168_v40 = vsel %vm516_vm14, %v141_v2, %v123_v13  ;;  %v169_v49 = vsel %vm516_vm14, %v133_v7, %v124_v14 }
  0x3b   :  { %267 = vst [vmem:[%s561_s3 + $0x20] sm:$0xff] %v165_v32  ;;  %v170_v16 = vsel %vm516_vm14, %v139_v8, %v125_v27  ;;  %v200_v17 = vmin.f32 %v435_v54, %v169_v49  ;;  %v201_v59 = vmax.f32 %v426_v50, %v167_v37  ;;  %v205_v19 = vmax.f32 %v433_v53, %v168_v40 }
  0x3c   :  { %v204_v2 = vmin.f32 %v446_v60, %v170_v16  ;;  %v212_v20 = vsub.f32 %v169_v49, %v167_v37  ;;  %v213_v22 = vsub.f32 %v170_v16, %v168_v40  ;;  %v121_v7 = vsel %vm478_vm12, 1.0, %v302_v1 }
  0x3d   :  { %v202_v24 = vsub.f32 %v200_v17, %v201_v59  ;;  %v166_v5 = vsel %vm516_vm14, 2.0, %v121_v7  ;;  %vm223_vm15 = vcmp.gt.f32.partialorder %v165_v32, 0.3 }
  0x3e   :  { %v206_v8 = vsub.f32 %v204_v2, %v205_v19  ;;  %v214_v26 = vmul.f32 %v213_v22, %v212_v20  ;;  %269 = vst [vmem:[%s561_s3 + $0x30] sm:$0xff] %v166_v5  ;;  %v263_v50 = vsel %vm223_vm15, 1.0, %v302_v1 }
  0x3f   :  { %v203_v53 = vmax.f32 %v202_v24, 0.0  ;;  %270 = vst [vmem:[%s561_s3 + $0x38] sm:$0xff] %v263_v50 }
  0x40   :  { %v207_v54 = vmax.f32 %v206_v8, 0.0  ;;  %v215_v60 = vadd.f32 %v214_v26, %v211_v15 }
  0x42   :  { %v208_v4 = vmul.f32 %v207_v54, %v203_v53 }
  0x44   :  { %v216_v28 = vsub.f32 %v215_v60, %v208_v4 }
  0x46   :  { %283 = vrcp.f32 %v216_v28 }
  0x4c   :  { %v284_v29 = vpop.eup %283 }
  0x4d   :  { %v218_v30 = vmul.f32 %v284_v29, %v208_v4 }
  0x4f   :  { %v219_v31 = vadd.f32 0.1, %v218_v30 }
  0x51   :  { %285 = vlog2.f32 %v219_v31 }
  0x57   :  { %v286_v33 = vpop.eup %285 }
  0x58   :  { %v221_v34 = vmul.f32 0.6931472, %v286_v33 }
  0x5a   :  { %v222_v35 = vsub.f32 0.0, %v221_v34 }
  0x5c   :  { %268 = vst [vmem:[%s561_s3 + $0x28] sm:$0xff] %v222_v35 }
  0x5d   :  { %245 = vsyncpa [#allocation3], 1 }

</bundles_post_ra>
